<compile_context>
chip_gen: v7x
topology: tpu7x:2x2x1
jax: 0.10.0
libtpu: 0.0.40
codegen_flags: <defaults>
</compile_context>

<pallas_src>
import functools
import math

import numpy as np
import jax
import jax.numpy as jnp
from jax.experimental import pallas as pl
from jax.experimental.pallas import tpu as pltpu


# ------------------------------- Pallas kernel -------------------------------

def _ghost_kernel(x_ref, w1_ref, b1_ref, w2_ref, b2_ref, ml_ref, mr_ref, o_ref,
                  *, H, W, Cinit):
    """Fused GhostModule forward for one batch element.

    Layout: channels on sublanes, flattened H*W pixels on lanes.
      x_ref : (1, Cin, H*W)      input activations (NCHW, spatial flattened)
      w1_ref: (Cinit, Cin)       1x1 conv weight with BN1 scale folded in
      b1_ref: (Cinit, 1)         BN1 folded bias
      w2_ref: (Cinit, 9)         depthwise 3x3 taps (row-major kh*3+kw), BN2 folded
      b2_ref: (Cinit, 1)         BN2 folded bias
      ml_ref: (1, H*W)           1.0 where output column w >= 1    (valid for dw=-1)
      mr_ref: (1, H*W)           1.0 where output column w <= W-2  (valid for dw=+1)
      o_ref : (1, 2*Cinit, H*W)  [x1 ; x2] written to disjoint channel slices
    """
    HW = H * W
    PAD = W + 1

    # ---- primary_conv: 1x1 conv as (Cinit,Cin)@(Cin,HW) matmul + bias + ReLU
    x = x_ref[0]                                                    # (Cin, HW)
    x1 = jnp.dot(w1_ref[...], x, preferred_element_type=jnp.float32)
    x1 = jnp.maximum(x1 + b1_ref[...], 0.0)                         # (Cinit, HW) f32
    o_ref[0, 0:Cinit, :] = x1.astype(o_ref.dtype)

    # ---- cheap_operation: depthwise 3x3 + bias + ReLU, consuming x1 in VMEM.
    # Zero-pad one flattened row (+1 element) on each side; each 3x3 tap is a
    # statically shifted slice.  Top/bottom image edges land in the zero halo
    # automatically; left/right edges are zeroed by the two lane masks.
    zpad = jnp.zeros((Cinit, PAD), jnp.float32)
    xp = jnp.concatenate([zpad, x1, zpad], axis=1)                  # (Cinit, HW+2*PAD)
    ml = ml_ref[...]                                                # (1, HW)
    mr = mr_ref[...]
    acc = jnp.zeros((Cinit, HW), jnp.float32)
    for kh in range(3):                                             # static unrolled taps
        for kw in range(3):
            dh, dw = kh - 1, kw - 1
            start = PAD + dh * W + dw
            win = xp[:, start:start + HW]                           # (Cinit, HW)
            tap = w2_ref[:, kh * 3 + kw:kh * 3 + kw + 1]            # (Cinit, 1)
            contrib = win * tap
            if dw == -1:
                contrib = contrib * ml
            elif dw == 1:
                contrib = contrib * mr
            acc = acc + contrib
    x2 = jnp.maximum(acc + b2_ref[...], 0.0)
    o_ref[0, Cinit:2 * Cinit, :] = x2.astype(o_ref.dtype)


# --------------------------------- wrapper -----------------------------------

def ghost_module_forward(x_nchw, params, oup):
    """GhostModule forward. x_nchw: (N, Cin, H, W) -> (N, oup, H, W)."""
    w1f, b1, w2f, b2 = params
    N, Cin, H, W = x_nchw.shape
    Cinit = w1f.shape[0]
    HW = H * W

    x_flat = x_nchw.reshape(N, Cin, HW)          # collapse trailing dims: free

    # lane masks for the left/right image edges of the flattened depthwise conv
    w_idx = jnp.arange(HW, dtype=jnp.int32) % W
    mask_l = (w_idx >= 1).astype(jnp.float32).reshape(1, HW)
    mask_r = (w_idx <= W - 2).astype(jnp.float32).reshape(1, HW)

    # TODO(synk): for very large feature maps (v7x 64 MiB VMEM) add a halo-aware
    # pixel-row tile grid axis instead of one whole-image block per batch element.
    out_flat = pl.pallas_call(
        functools.partial(_ghost_kernel, H=H, W=W, Cinit=Cinit),
        out_shape=jax.ShapeDtypeStruct((N, 2 * Cinit, HW), x_nchw.dtype),
        grid=(N,),
        in_specs=[
            pl.BlockSpec((1, Cin, HW), lambda n: (n, 0, 0)),
            pl.BlockSpec((Cinit, Cin), lambda n: (0, 0)),
            pl.BlockSpec((Cinit, 1), lambda n: (0, 0)),
            pl.BlockSpec((Cinit, 9), lambda n: (0, 0)),
            pl.BlockSpec((Cinit, 1), lambda n: (0, 0)),
            pl.BlockSpec((1, HW), lambda n: (0, 0)),
            pl.BlockSpec((1, HW), lambda n: (0, 0)),
        ],
        out_specs=pl.BlockSpec((1, 2 * Cinit, HW), lambda n: (n, 0, 0)),
        compiler_params=pltpu.CompilerParams(dimension_semantics=("parallel",)),
    )(x_flat, w1f, b1, w2f, b2, mask_l, mask_r)

    out = out_flat.reshape(N, 2 * Cinit, H, W)   # free reshape, still NCHW
    return out[:, :oup]                          # no-op when ratio=2 (oup == 2*Cinit)


# --------------------------- deterministic parameters -------------------------

def make_params(key, inp, oup, ratio=2, eps=1e-5):
    """Build GhostModule params with eval-mode BatchNorm folded into the weights."""
    init_channels = math.ceil(oup / ratio)
    new_channels = init_channels * (ratio - 1)
    assert new_channels == init_channels, "only ratio=2 (depthwise multiplier 1) supported"

    ks = jax.random.split(key, 10)
    # primary 1x1 conv weight: torch layout (Cinit, Cin, 1, 1) -> (Cinit, Cin)
    w1 = jax.random.normal(ks[0], (init_channels, inp), jnp.float32) / math.sqrt(inp)
    g1 = 0.5 + jax.random.uniform(ks[1], (init_channels,), jnp.float32)
    beta1 = 0.1 * jax.random.normal(ks[2], (init_channels,), jnp.float32)
    m1 = 0.1 * jax.random.normal(ks[3], (init_channels,), jnp.float32)
    v1 = 0.5 + jax.random.uniform(ks[4], (init_channels,), jnp.float32)
    s1 = g1 / jnp.sqrt(v1 + eps)
    w1f = w1 * s1[:, None]                                   # fold BN1 scale
    b1 = (beta1 - m1 * s1).reshape(init_channels, 1)

    # depthwise 3x3 weight: torch layout (Cinit, 1, 3, 3) -> (Cinit, 9)
    w2 = jax.random.normal(ks[5], (init_channels, 3, 3), jnp.float32) / 3.0
    g2 = 0.5 + jax.random.uniform(ks[6], (init_channels,), jnp.float32)
    beta2 = 0.1 * jax.random.normal(ks[7], (init_channels,), jnp.float32)
    m2 = 0.1 * jax.random.normal(ks[8], (init_channels,), jnp.float32)
    v2 = 0.5 + jax.random.uniform(ks[9], (init_channels,), jnp.float32)
    s2 = g2 / jnp.sqrt(v2 + eps)
    w2f = w2.reshape(init_channels, 9) * s2[:, None]         # fold BN2 scale
    b2 = (beta2 - m2 * s2).reshape(init_channels, 1)

    return w1f, b1, w2f, b2


# --------------------------------- reference ----------------------------------

def ghost_module_reference(x_nchw, params, oup):
    w1f, b1, w2f, b2 = params
    N, Cin, H, W = x_nchw.shape
    Cinit = w1f.shape[0]
    x1 = jnp.einsum("oc,nchw->nohw", w1f, x_nchw) + b1.reshape(1, Cinit, 1, 1)
    x1 = jnp.maximum(x1, 0.0)
    xp = jnp.pad(x1, ((0, 0), (0, 0), (1, 1), (1, 1)))
    acc = jnp.zeros_like(x1)
    for kh in range(3):
        for kw in range(3):
            acc = acc + xp[:, :, kh:kh + H, kw:kw + W] * w2f[:, kh * 3 + kw].reshape(1, Cinit, 1, 1)
    x2 = jnp.maximum(acc + b2.reshape(1, Cinit, 1, 1), 0.0)
    out = jnp.concatenate([x1, x2], axis=1)
    return out[:, :oup]


# ----------------------------------- main --------------------------------------

if __name__ == "__main__":
    key = jax.random.PRNGKey(0)
    k_x, k_p = jax.random.split(key)

    N, inp, H, W = 2, 4, 16, 16
    oup = 8                       # ratio=2 -> init_channels=4, new_channels=4

    x = jax.random.normal(k_x, (N, inp, H, W), jnp.float32)   # NCHW like PyTorch
    params = make_params(k_p, inp, oup)

    out = ghost_module_forward(x, params, oup)
    out = jax.block_until_ready(out)

    ref = ghost_module_reference(x, params, oup)
    assert out.shape == (N, oup, H, W), out.shape
    assert np.allclose(np.asarray(out), np.asarray(ref), atol=1e-4, rtol=1e-4)

    print("KERNEL_OK")
</pallas_src>

<mosaic_0001>
module attributes {stable_mosaic.version = 11 : i64} {
  func.func @_ghost_kernel(%arg0: i32, %arg1: memref<1x4x256xf32, #tpu.memory_space<vmem>>, %arg2: memref<4x4xf32, #tpu.memory_space<vmem>>, %arg3: memref<4x1xf32, #tpu.memory_space<vmem>>, %arg4: memref<4x9xf32, #tpu.memory_space<vmem>>, %arg5: memref<4x1xf32, #tpu.memory_space<vmem>>, %arg6: memref<1x256xf32, #tpu.memory_space<vmem>>, %arg7: memref<1x256xf32, #tpu.memory_space<vmem>>, %arg8: memref<1x8x256xf32, #tpu.memory_space<vmem>>) attributes {dimension_semantics = [#tpu.dimension_semantics<parallel>], iteration_bounds = array<i64: 2>, scalar_prefetch = 0 : i64, scratch_operands = 0 : i64, tpu.core_type = #tpu.core_type<tc>, window_params = [{transform_indices = @transform_0, window_bounds = array<i64: 1, 4, 256>}, {pipeline_mode = #tpu.pipeline_mode<synchronous>, transform_indices = @transform_1, window_bounds = array<i64: 4, 4>}, {pipeline_mode = #tpu.pipeline_mode<synchronous>, transform_indices = @transform_2, window_bounds = array<i64: 4, 1>}, {pipeline_mode = #tpu.pipeline_mode<synchronous>, transform_indices = @transform_3, window_bounds = array<i64: 4, 9>}, {pipeline_mode = #tpu.pipeline_mode<synchronous>, transform_indices = @transform_4, window_bounds = array<i64: 4, 1>}, {pipeline_mode = #tpu.pipeline_mode<synchronous>, transform_indices = @transform_5, window_bounds = array<i64: 1, 256>}, {pipeline_mode = #tpu.pipeline_mode<synchronous>, transform_indices = @transform_6, window_bounds = array<i64: 1, 256>}, {transform_indices = @transform_7, window_bounds = array<i64: 1, 8, 256>}]} {
    %c0 = arith.constant 0 : index
    %c0_0 = arith.constant 0 : index
    %c0_1 = arith.constant 0 : index
    %0 = vector.load %arg1[%c0, %c0_0, %c0_1] : memref<1x4x256xf32, #tpu.memory_space<vmem>>, vector<1x4x256xf32>
    %1 = vector.shape_cast %0 : vector<1x4x256xf32> to vector<4x256xf32>
    %c0_2 = arith.constant 0 : index
    %c0_3 = arith.constant 0 : index
    %2 = vector.load %arg2[%c0_2, %c0_3] : memref<4x4xf32, #tpu.memory_space<vmem>>, vector<4x4xf32>
    %cst = arith.constant dense<0.000000e+00> : vector<4x256xf32>
    %3 = tpu.matmul %2, %1, %cst {dimension_numbers = #tpu.dot_dimension_numbers<[1], [0], [0], [1], [0, 0, 1, 1], [], []>} : vector<4x4xf32>, vector<4x256xf32>, vector<4x256xf32> -> vector<4x256xf32>
    %c0_4 = arith.constant 0 : index
    %c0_5 = arith.constant 0 : index
    %4 = vector.load %arg3[%c0_4, %c0_5] : memref<4x1xf32, #tpu.memory_space<vmem>>, vector<4x1xf32>
    %5 = vector.broadcast %4 : vector<4x1xf32> to vector<4x256xf32>
    %6 = arith.addf %3, %5 : vector<4x256xf32>
    %cst_6 = arith.constant 0.000000e+00 : f32
    %7 = vector.broadcast %cst_6 : f32 to vector<4x256xf32>
    %8 = arith.maximumf %6, %7 : vector<4x256xf32>
    %c0_7 = arith.constant 0 : index
    %c0_8 = arith.constant 0 : index
    %c0_9 = arith.constant 0 : index
    %9 = vector.load %arg8[%c0_7, %c0_8, %c0_9] : memref<1x8x256xf32, #tpu.memory_space<vmem>>, vector<1x4x256xf32>
    %10 = vector.shape_cast %9 : vector<1x4x256xf32> to vector<4x256xf32>
    %11 = vector.shape_cast %8 : vector<4x256xf32> to vector<1x4x256xf32>
    tpu.vector_store %arg8[%c0_7, %c0_8, %c0_9], %11 {strides = array<i32>} : memref<1x8x256xf32, #tpu.memory_space<vmem>>, vector<1x4x256xf32>,
    %cst_10 = arith.constant 0.000000e+00 : f32
    %12 = vector.broadcast %cst_10 : f32 to vector<4x17xf32>
    %13 = tpu.concatenate %12, %8, %12 in 1 : vector<4x17xf32>, vector<4x256xf32>, vector<4x17xf32> -> vector<4x290xf32>
    %c0_11 = arith.constant 0 : index
    %c0_12 = arith.constant 0 : index
    %14 = vector.load %arg6[%c0_11, %c0_12] : memref<1x256xf32, #tpu.memory_space<vmem>>, vector<1x256xf32>
    %c0_13 = arith.constant 0 : index
    %c0_14 = arith.constant 0 : index
    %15 = vector.load %arg7[%c0_13, %c0_14] : memref<1x256xf32, #tpu.memory_space<vmem>>, vector<1x256xf32>
    %cst_15 = arith.constant 0.000000e+00 : f32
    %16 = vector.broadcast %cst_15 : f32 to vector<4x256xf32>
    %17 = vector.extract_strided_slice %13 {offsets = [0, 0], sizes = [4, 256], strides = [1, 1]} : vector<4x290xf32> to vector<4x256xf32>
    %c0_16 = arith.constant 0 : index
    %c0_17 = arith.constant 0 : index
    %18 = vector.load %arg4[%c0_16, %c0_17] : memref<4x9xf32, #tpu.memory_space<vmem>>, vector<4x1xf32>
    %19 = vector.broadcast %18 : vector<4x1xf32> to vector<4x256xf32>
    %20 = arith.mulf %17, %19 : vector<4x256xf32>
    %21 = vector.broadcast %14 : vector<1x256xf32> to vector<4x256xf32>
    %22 = arith.mulf %20, %21 : vector<4x256xf32>
    %23 = arith.addf %16, %22 : vector<4x256xf32>
    %24 = vector.extract_strided_slice %13 {offsets = [0, 1], sizes = [4, 256], strides = [1, 1]} : vector<4x290xf32> to vector<4x256xf32>
    %c0_18 = arith.constant 0 : index
    %c1 = arith.constant 1 : index
    %25 = vector.load %arg4[%c0_18, %c1] : memref<4x9xf32, #tpu.memory_space<vmem>>, vector<4x1xf32>
    %26 = vector.broadcast %25 : vector<4x1xf32> to vector<4x256xf32>
    %27 = arith.mulf %24, %26 : vector<4x256xf32>
    %28 = arith.addf %23, %27 : vector<4x256xf32>
    %29 = vector.extract_strided_slice %13 {offsets = [0, 2], sizes = [4, 256], strides = [1, 1]} : vector<4x290xf32> to vector<4x256xf32>
    %c0_19 = arith.constant 0 : index
    %c2 = arith.constant 2 : index
    %30 = vector.load %arg4[%c0_19, %c2] : memref<4x9xf32, #tpu.memory_space<vmem>>, vector<4x1xf32>
    %31 = vector.broadcast %30 : vector<4x1xf32> to vector<4x256xf32>
    %32 = arith.mulf %29, %31 : vector<4x256xf32>
    %33 = vector.broadcast %15 : vector<1x256xf32> to vector<4x256xf32>
    %34 = arith.mulf %32, %33 : vector<4x256xf32>
    %35 = arith.addf %28, %34 : vector<4x256xf32>
    %36 = vector.extract_strided_slice %13 {offsets = [0, 16], sizes = [4, 256], strides = [1, 1]} : vector<4x290xf32> to vector<4x256xf32>
    %c0_20 = arith.constant 0 : index
    %c3 = arith.constant 3 : index
    %37 = vector.load %arg4[%c0_20, %c3] : memref<4x9xf32, #tpu.memory_space<vmem>>, vector<4x1xf32>
    %38 = vector.broadcast %37 : vector<4x1xf32> to vector<4x256xf32>
    %39 = arith.mulf %36, %38 : vector<4x256xf32>
    %40 = vector.broadcast %14 : vector<1x256xf32> to vector<4x256xf32>
    %41 = arith.mulf %39, %40 : vector<4x256xf32>
    %42 = arith.addf %35, %41 : vector<4x256xf32>
    %43 = vector.extract_strided_slice %13 {offsets = [0, 17], sizes = [4, 256], strides = [1, 1]} : vector<4x290xf32> to vector<4x256xf32>
    %c0_21 = arith.constant 0 : index
    %c4 = arith.constant 4 : index
    %44 = vector.load %arg4[%c0_21, %c4] : memref<4x9xf32, #tpu.memory_space<vmem>>, vector<4x1xf32>
    %45 = vector.broadcast %44 : vector<4x1xf32> to vector<4x256xf32>
    %46 = arith.mulf %43, %45 : vector<4x256xf32>
    %47 = arith.addf %42, %46 : vector<4x256xf32>
    %48 = vector.extract_strided_slice %13 {offsets = [0, 18], sizes = [4, 256], strides = [1, 1]} : vector<4x290xf32> to vector<4x256xf32>
    %c0_22 = arith.constant 0 : index
    %c5 = arith.constant 5 : index
    %49 = vector.load %arg4[%c0_22, %c5] : memref<4x9xf32, #tpu.memory_space<vmem>>, vector<4x1xf32>
    %50 = vector.broadcast %49 : vector<4x1xf32> to vector<4x256xf32>
    %51 = arith.mulf %48, %50 : vector<4x256xf32>
    %52 = vector.broadcast %15 : vector<1x256xf32> to vector<4x256xf32>
    %53 = arith.mulf %51, %52 : vector<4x256xf32>
    %54 = arith.addf %47, %53 : vector<4x256xf32>
    %55 = vector.extract_strided_slice %13 {offsets = [0, 32], sizes = [4, 256], strides = [1, 1]} : vector<4x290xf32> to vector<4x256xf32>
    %c0_23 = arith.constant 0 : index
    %c6 = arith.constant 6 : index
    %56 = vector.load %arg4[%c0_23, %c6] : memref<4x9xf32, #tpu.memory_space<vmem>>, vector<4x1xf32>
    %57 = vector.broadcast %56 : vector<4x1xf32> to vector<4x256xf32>
    %58 = arith.mulf %55, %57 : vector<4x256xf32>
    %59 = vector.broadcast %14 : vector<1x256xf32> to vector<4x256xf32>
    %60 = arith.mulf %58, %59 : vector<4x256xf32>
    %61 = arith.addf %54, %60 : vector<4x256xf32>
    %62 = vector.extract_strided_slice %13 {offsets = [0, 33], sizes = [4, 256], strides = [1, 1]} : vector<4x290xf32> to vector<4x256xf32>
    %c0_24 = arith.constant 0 : index
    %c7 = arith.constant 7 : index
    %63 = vector.load %arg4[%c0_24, %c7] : memref<4x9xf32, #tpu.memory_space<vmem>>, vector<4x1xf32>
    %64 = vector.broadcast %63 : vector<4x1xf32> to vector<4x256xf32>
    %65 = arith.mulf %62, %64 : vector<4x256xf32>
    %66 = arith.addf %61, %65 : vector<4x256xf32>
    %67 = vector.extract_strided_slice %13 {offsets = [0, 34], sizes = [4, 256], strides = [1, 1]} : vector<4x290xf32> to vector<4x256xf32>
    %c0_25 = arith.constant 0 : index
    %c8 = arith.constant 8 : index
    %68 = vector.load %arg4[%c0_25, %c8] : memref<4x9xf32, #tpu.memory_space<vmem>>, vector<4x1xf32>
    %69 = vector.broadcast %68 : vector<4x1xf32> to vector<4x256xf32>
    %70 = arith.mulf %67, %69 : vector<4x256xf32>
    %71 = vector.broadcast %15 : vector<1x256xf32> to vector<4x256xf32>
    %72 = arith.mulf %70, %71 : vector<4x256xf32>
    %73 = arith.addf %66, %72 : vector<4x256xf32>
    %c0_26 = arith.constant 0 : index
    %c0_27 = arith.constant 0 : index
    %74 = vector.load %arg5[%c0_26, %c0_27] : memref<4x1xf32, #tpu.memory_space<vmem>>, vector<4x1xf32>
    %75 = vector.broadcast %74 : vector<4x1xf32> to vector<4x256xf32>
    %76 = arith.addf %73, %75 : vector<4x256xf32>
    %cst_28 = arith.constant 0.000000e+00 : f32
    %77 = vector.broadcast %cst_28 : f32 to vector<4x256xf32>
    %78 = arith.maximumf %76, %77 : vector<4x256xf32>
    %c0_29 = arith.constant 0 : index
    %c4_30 = arith.constant 4 : index
    %c0_31 = arith.constant 0 : index
    %79 = vector.load %arg8[%c0_29, %c4_30, %c0_31] : memref<1x8x256xf32, #tpu.memory_space<vmem>>, vector<1x4x256xf32>
    %80 = vector.shape_cast %79 : vector<1x4x256xf32> to vector<4x256xf32>
    %81 = vector.shape_cast %78 : vector<4x256xf32> to vector<1x4x256xf32>
    tpu.vector_store %arg8[%c0_29, %c4_30, %c0_31], %81 {strides = array<i32>} : memref<1x8x256xf32, #tpu.memory_space<vmem>>, vector<1x4x256xf32>,
    return
  }
  func.func @transform_0(%arg0: i32) -> (i32, i32, i32) {
    %c0_i32 = arith.constant 0 : i32
    %c0_i32_0 = arith.constant 0 : i32
    %c0_i32_1 = arith.constant 0 : i32
    return %arg0, %c0_i32, %c0_i32_0 : i32, i32, i32
  }
  func.func @transform_1(%arg0: i32) -> (i32, i32) {
    %c0_i32 = arith.constant 0 : i32
    %c0_i32_0 = arith.constant 0 : i32
    %c0_i32_1 = arith.constant 0 : i32
    return %c0_i32, %c0_i32_0 : i32, i32
  }
  func.func @transform_2(%arg0: i32) -> (i32, i32) {
    %c0_i32 = arith.constant 0 : i32
    %c0_i32_0 = arith.constant 0 : i32
    %c0_i32_1 = arith.constant 0 : i32
    return %c0_i32, %c0_i32_0 : i32, i32
  }
  func.func @transform_3(%arg0: i32) -> (i32, i32) {
    %c0_i32 = arith.constant 0 : i32
    %c0_i32_0 = arith.constant 0 : i32
    %c0_i32_1 = arith.constant 0 : i32
    return %c0_i32, %c0_i32_0 : i32, i32
  }
  func.func @transform_4(%arg0: i32) -> (i32, i32) {
    %c0_i32 = arith.constant 0 : i32
    %c0_i32_0 = arith.constant 0 : i32
    %c0_i32_1 = arith.constant 0 : i32
    return %c0_i32, %c0_i32_0 : i32, i32
  }
  func.func @transform_5(%arg0: i32) -> (i32, i32) {
    %c0_i32 = arith.constant 0 : i32
    %c0_i32_0 = arith.constant 0 : i32
    %c0_i32_1 = arith.constant 0 : i32
    return %c0_i32, %c0_i32_0 : i32, i32
  }
  func.func @transform_6(%arg0: i32) -> (i32, i32) {
    %c0_i32 = arith.constant 0 : i32
    %c0_i32_0 = arith.constant 0 : i32
    %c0_i32_1 = arith.constant 0 : i32
    return %c0_i32, %c0_i32_0 : i32, i32
  }
  func.func @transform_7(%arg0: i32) -> (i32, i32, i32) {
    %c0_i32 = arith.constant 0 : i32
    %c0_i32_0 = arith.constant 0 : i32
    %c0_i32_1 = arith.constant 0 : i32
    return %arg0, %c0_i32, %c0_i32_0 : i32, i32, i32
  }
}

</mosaic_0001>

<bundles_post_ra>
// kernel: tpu_custom_call.1
= control target key start
LH: loop header
LB: loop body
LE: loop exit
PB: predicated region body
PF: predicated region fallthrough
CT: control target
= control target key end

     0   :  { %12 = vsyncpa [#allocation3], 0  ;;  %s1341_s0 = inlined_call_operand.hbm [shape: f32[2,4,256], index: 0, kind: input, shape index: {}]   ;;  %s1342_s1 = inlined_call_operand.vmem [shape: f32[4,4], index: 1, kind: input, shape index: {}]   ;;  %s1343_s2 = inlined_call_operand.vmem [shape: f32[4,1], index: 2, kind: input, shape index: {}]   ;;  %s1344_s3 = inlined_call_operand.vmem [shape: f32[4,9], index: 3, kind: input, shape index: {}]   ;;  %s1345_s4 = inlined_call_operand.vmem [shape: f32[4,1], index: 4, kind: input, shape index: {}]   ;;  %s1346_s5 = inlined_call_operand.vmem [shape: f32[1,256], index: 5, kind: input, shape index: {}]   ;;  %s1347_s6 = inlined_call_operand.vmem [shape: f32[1,256], index: 6, kind: input, shape index: {}]   ;;  %s1348_s7 = inlined_call_operand.hbm [shape: f32[2,8,256], index: 7, kind: output, shape index: {}]  }
   0x1   :  { %14 = vsyncpa [#allocation3 + $0x1], 0 }
   0x2   :  { %15 = vsyncpa [#allocation4], 0 }
   0x3   :  { %17 = vsyncpa [#allocation4 + $0x1], 0  ;;  %s1048_s24 = smov 0   ;;  %s1050_s25 = smov 0  }
   0x4   :  { %s1052_s26 = smov 0   ;;  %s1054_s27 = smov 0  }
   0x5 LB: > { %s1069_s28 = sadd.s32 4294967295, %s980_s27   ;;  %s783_s29 = sadd.s32 4294967294, %s980_s27   ;;  %s980_s27 = sphi %s1054_s27, %s1363_s27   ;;  %s976_s26 = sphi %s1052_s26, %s1362_s26   ;;  %s972_s25 = sphi %s1050_s25, %s1361_s25   ;;  %s968_s24 = sphi %s1048_s24, %s1360_s24  }
   0x6   : > { %s1073_s30 = sadd.s32 1, %s980_s27   ;;  %s30_s8 = sadd.s32 1, %s976_s26 }
   0x7   : > { %s27_s9 = ssub.s32 %s980_s27, %s1073_s30  ;;  %p37_p0 = scmp.ne.s32.totalorder %s976_s26, %s972_s25 }
   0x8   : > { %p28_p1 = scmp.eq.s32.totalorder %s27_s9, 0  ;;  %p38_p2 = scmp.eq.s32.totalorder %s980_s27, 0 }
   0x9   : > { %p43_p3 = scmp.ne.s32.totalorder %s972_s25, %s968_s24  ;;  %p44_p4 = scmp.eq.s32.totalorder %s1069_s28, 0 }
   0xa   : > { %s1085_s10 = scalar_select %p28_p1, %s976_s26, %s30_s8  }
   0xb   : > { %p1087_p5 = por %p38_p2, %p37_p0  ;;  %p1091_p6 = por %p44_p4, %p43_p3 }
   0xc   : > { %p193_p7 = scmp.eq.s32.totalorder %s1069_s28, 1  ;;  %p199_p8 = scmp.eq.s32.totalorder %s783_s29, 1 }
   0xd   : > { %p814_p10 = scmp.lt.s32.totalorder %s980_s27, 2  ;;  %s237_s15 = sand.u32 1, %s976_s26  }
   0xe   : > { %p1098_p11 = por %p193_p7, %p37_p0  ;;  %p1102_p12 = por %p199_p8, %p43_p3 }
   0xf   : > { %s800_s16 = sshll.u32 %s980_s27, 7  ;;  %s786_s17 = sshll.u32 %s237_s15, 3 }
  0x10   : > { %s1352_s13 = scalar_select %p1098_p11, 1, 0 }
  0x11   : > { %s1353_s14 = scalar_select %p1102_p12, 1, 0 }
  0x12   : > { %s1111_s20 = scalar_lea.hbm %s1341_s0, %s800_s16  ;;  %s241_s21 = scalar_lea.vmem [#allocation2], %s786_s17 }
  0x13   : > { %s249_s22 = sshll.u32 %s241_s21, 4  ;;  %p1115_p13 = pnand %p814_p10, %p1087_p5  ;;  %s1119_s22 = int_to_ptr.vmem [resolvable:$true] %s249_s22 }
  0x14   : > { %s238_s29 = scalar_lea.sflag [#allocation3], %s237_s15  ;;  %s884_s8 = scalar_lea.hbm %s1111_s20, 128 }
  0x15   : > { %p885_p2 = scmp.ne.s32.totalorder %s1111_s20, %s884_s8  ;;  %p886_p3 = pneg %p1115_p13 }
  0x16   : > { %s889_s16 = scalar_lea.hbm %s1341_s0, 256  ;;  %p890_p5 = scmp.lt.u32.totalorder %s1111_s20, %s1341_s0 }
  0x17   : > { %p887_p4 = pnand %p886_p3, %p885_p2  ;;  %p891_p8 = scmp.lt.u32.totalorder %s889_s16, %s884_s8 }
  0x18   : > { %p893_p9 = scmp.lt.u32.totalorder %s884_s8, %s1111_s20 }
  0x19   : > { %p888_p7 = pneg %p887_p4  ;;  %p892_p10 = por %p891_p8, %p890_p5 }
  0x1b   : > { %p894_p0 = por %p893_p9, %p892_p10 }
  0x1d   : > { %p895_p1 = pnand %p894_p0, %p888_p7 }
  0x1f   : > { %898 = shalt.err (!%p895_p1)
}
  0x20   : > { %s899_s15 = scalar_lea.vmem %s1119_s22, 128  ;;  %s982_s19 = smov [#allocation2]  }
  0x21   : > { %p900_p2 = scmp.ne.s32.totalorder %s1119_s22, %s899_s15  ;;  %s904_s21 = sshll.u32 %s982_s19, 4  ;;  %s905_s21 = int_to_ptr.vmem [resolvable:$false] %s904_s21 }
  0x22   : > { %s906_s9 = scalar_lea.vmem %s905_s21, 256  ;;  %p907_p11 = scmp.lt.s32.totalorder %s1119_s22, %s905_s21 }
  0x23   : > { %p902_p4 = pnand %p900_p2, %p886_p3  ;;  %p908_p5 = scmp.lt.s32.totalorder %s906_s9, %s899_s15 }
  0x25   : > { %p903_p12 = pneg %p902_p4  ;;  %p909_p8 = por %p908_p5, %p907_p11 }
  0x27   : > { %p910_p9 = pnand %p909_p8, %p903_p12 }
  0x29   : > { %913 = shalt.err (!%p910_p9)
}
  0x2a   : > { %809 = dma.hbm_to_vmem [thread:$0]  (!%p1115_p13), %s1111_s20, 128, %s1119_s22, %s238_s29  }
  0x2b   : > { %p1355_p0 = scmp.lt.s32.totalorder %s980_s27, 3  ;;  %p1356_p1 = scmp.ge.s32.totalorder %s980_s27, 1 }
  0x2d   : > { %p255_p3 = pnand %p1356_p1, %p1355_p0 }
  0x2e   : > { %s1153_s8 = sand.u32 (!%p255_p3), 1, %s972_s25  }
  0x2f   : > { %258 = sbr.rel (%p255_p3) target bundleno = 593 (0x251), region = 48  ;;  %s790_s11 = sshll.u32 (!%p255_p3), %s1153_s8, 3 }
  0x30   : > { %s261_s16 = scalar_lea.sflag (!%p255_p3), [#allocation3], %s1153_s8  ;;  %s264_s17 = scalar_lea.vmem (!%p255_p3), [#allocation2], %s790_s11 }
  0x36   : > { %959 = dma.done.wait (%p1091_p6), %s261_s16, 128  }
  0x37   : > { %961 = vsyncadd (%p1091_p6), %s261_s16, 4294967168  ;;  %v983_v0 = vmov 0.0   ;;  %v984_v1 = vmov 0   ;;  %v985_v2 = vmov 2   ;;  %v295_v3 = vld [vmem:[%s264_s17] sm:$0xff]  ;;  %vm309_vm0 = vcmask 1043456  }
  0x38   : > { %378 = vmatprep.mubr.f32.mxu0 %v983_v0  ;;  %872 = vset.pattern.permute.xlu0 %v984_v1  ;;  %v297_v4 = vld [vmem:[%s1343_s2] sm:$0xf]  ;;  %v413_v5 = vlaneseq  ;;  %v304_v6 = vcombine.high %v295_v3, %v295_v3  ;;  %vm305_vm1 = vcmask 31744   ;;  %v986_v10 = vmov 1   ;;  %s991_s21 = smov 2   ;;  %s992_s16 = smov 16  }
  0x39   : > { %874 = vset.pattern.permute.xlu1 %v985_v2  ;;  %300 = vperm.xlu0 %872, %v297_v4   ;;  %v1168_v7 = vld [vmem:[%s1344_s3] sm:$0xf]  ;;  %v987_v11 = vmov 3   ;;  %v988_v14 = vmov 5   ;;  %v989_v15 = vmov 4   ;;  %v990_v18 = vmov 6  }
  0x3a   : > { %v296_v8 = vld [vmem:[%s1342_s1] sm:$0xf]  ;;  %451 = vperm.xlu1 %874, %v1168_v7   ;;  %792 = vmatprep.subr.msk.mxu0 %vm309_vm0, %v304_v6  ;;  %v414_v9 = vshrl.u32 %v413_v5, 7  ;;  %v993_v23 = vmov 8   ;;  %v994_v24 = vmov 7   ;;  %s791_s17 = sshll.u32 %s1153_s8, 4 }
  0x3b   : > { %793 = vmatpush1.msk.msra.mxu0 %vm309_vm0, %v295_v3  ;;  %v403_v13 = vld [vmem:[%s1347_s6] sm:$0x3]  ;;  %s1192_s20 = scalar_lea.vmem [#allocation5], %s791_s17  ;;  %s995_s22 = smov 17   ;;  %vm395_vm2 = vcmask 138240   ;;  %vm470_vm3 = vcmask 15360  }
  0x3c   : > { %794 = vmatmul.mubr.msk.f32.vlgmr.msra.gmra.mrb[0].mxu0 %vm305_vm1, %v296_v8  ;;  %v415_v12 = vsub.s32 0, %v414_v9  ;;  %v419_v17 = vsub.s32 1, %v414_v9  ;;  %v402_v20 = vld [vmem:[%s1346_s5] sm:$0x3]  ;;  %s996_s23 = smov 18   ;;  %s997_s29 = smov 32  }
  0x3d   : > { %873 = vset.pattern.permute.xlu0 %v986_v10  ;;  %s998_s12 = smov 34   ;;  %v680_v32 = vld [vmem:[%s1345_s4] sm:$0xf]  ;;  %s999_s19 = smov 111   ;;  %vm598_vm4 = vcmask 261120   ;;  %vm656_vm5 = vcmask 277504  }
  0x3e   : > { %875 = vset.pattern.permute.xlu1 %v987_v11  ;;  %428 = vperm.xlu0 %873, %v1168_v7   ;;  %v461_v16 = vrot.slane %v403_v13, %v415_v12  ;;  %v465_v19 = vrot.slane %v403_v13, %v419_v17  ;;  %v1185_v21 = vrot.slane %v402_v20, %v415_v12  ;;  %s1001_s9 = smov 95   ;;  %s1002_s11 = smov 112   ;;  %vm505_vm6 = vcmask 130048  }
  0x3f   : > { %495 = vperm.xlu1 %875, %v1168_v7   ;;  %v1188_v22 = vrot.slane %v402_v20, %v419_v17  ;;  %s1004_s17 = smov 126   ;;  %vm563_vm7 = vcmask 146432   ;;  %vm443_vm8 = vcmask 1039360   ;;  %vm487_vm9 = vcmask 1031168   ;;  %p1357_p11 = scmp.ne.s32.totalorder %s1352_s13, 0 }
  0x40   : > { %vm522_vm10 = vcmask 916480   ;;  %vm545_vm11 = vcmask 908288   ;;  %vm580_vm12 = vcmask 900096   ;;  %vm615_vm13 = vcmask 785408  }
  0x41   : > { %vm638_vm14 = vcmask 777216   ;;  %vm673_vm15 = vcmask 769024  }
  0x42   : > { %877 = vset.pattern.permute.xlu0 %v988_v14 }
  0x43   : > { %876 = vset.pattern.permute.xlu1 %v989_v15  ;;  %553 = vperm.xlu0 %877, %v1168_v7  }
  0x44   : > { %530 = vperm.xlu1 %876, %v1168_v7  }
  0x47   : > { %878 = vset.pattern.permute.xlu0 %v990_v18 }
  0x48   : > { %466 = vrot.lane.b32.xlu1 %v461_v16, %s991_s21  ;;  %588 = vperm.xlu0 %878, %v1168_v7  }
  0x49   : > { %880 = vset.pattern.permute.xlu1 %v993_v23 }
  0x4c   : > { %468 = vrot.lane.b32.xlu1 %v465_v19, %s991_s21  ;;  %879 = vset.pattern.permute.xlu0 %v994_v24  ;;  %s1000_s21 = smov 127  }
  0x50   : > { %501 = vrot.lane.b32.xlu1 %v1185_v21, %s992_s16 }
  0x54   : > { %503 = vrot.lane.b32.xlu1 %v1188_v22, %s992_s16  ;;  %s1003_s16 = smov 110  }
  0xb8   : > { %v301_v25 = vpop.permute.xlu0 %300 }
  0xb9   : > { %v1206_v33 = vpop.permute.xlu1 %451 }
  0xbd   : > { %v429_v38 = vpop.permute.xlu0 %428 }
  0xbe   : > { %v1208_v34 = vpop.permute.xlu1 %495 }
  0xc2   : > { %v1214_v40 = vpop.permute.xlu0 %553 }
  0xc3   : > { %v531_v35 = vpop.permute.xlu1 %530 }
  0xc7   : > { %v467_v36 = vpop.permute.xlu1 %466  ;;  %v1218_v42 = vpop.permute.xlu0 %588 }
  0xcb   : > { %v1210_v37 = vpop.permute.xlu1 %468 }
  0xcf   : > { %v1212_v39 = vpop.permute.xlu1 %501 }
  0xd3   : > { %v1216_v41 = vpop.permute.xlu1 %503 }
 0x10f   : > { %v380_v26 = vpop.f32.mrb[0].mxu0 }
 0x110   : > { %v381_v27 = vadd.f32 %v380_v26, %v301_v25  ;;  %v382_v28 = vpop.f32.mrb[1].mxu0 }
 0x111   : > { %v383_v29 = vadd.f32 %v382_v28, %v301_v25 }
 0x112   : > { %v385_v30 = vmax.f32 %v381_v27, 0.0 }
 0x113   : > { %v386_v31 = vmax.f32 %v383_v29, 0.0  ;;  %v506_v29 = vsel %vm505_vm6, %v1212_v39, %v1216_v41 }
 0x114   : > { %387 = vst [vmem:[%s1192_s20] sm:$0xf] %v385_v30  ;;  %391 = vrot.lane.b32.xlu1 %v385_v30, %s995_s22 }
 0x115   : > { %388 = vst [vmem:[%s1192_s20 + $0x8] sm:$0xf] %v386_v31  ;;  %393 = vrot.lane.b32.xlu0 %v386_v31, %s995_s22  ;;  %s1005_s22 = smov 96  }
 0x118   : > { %646 = vperm.xlu1 %880, %v1168_v7  }
 0x119   : > { %623 = vperm.xlu0 %879, %v1168_v7  }
 0x11c   : > { %559 = vrot.lane.b32.xlu1 %v461_v16, %s996_s23 }
 0x11d   : > { %881 = vset.pattern.permute.xlu1 %v984_v1  ;;  %561 = vrot.lane.b32.xlu0 %v465_v19, %s996_s23  ;;  %s1006_s23 = smov 94  }
 0x11e   : > { %882 = vset.pattern.permute.xlu0 %v984_v1  ;;  %v471_v1 = vsel %vm470_vm3, %v467_v36, %v1210_v37 }
 0x120   : > { %594 = vrot.lane.b32.xlu1 %v1185_v21, %s997_s29 }
 0x121   : > { %596 = vrot.lane.b32.xlu0 %v1188_v22, %s997_s29  ;;  %s801_s29 = sshll.u32 %s1069_s28, 8  ;;  %s1007_s28 = smov [#allocation5]  }
 0x124   : > { %652 = vrot.lane.b32.xlu1 %v461_v16, %s998_s12 }
 0x125   : > { %654 = vrot.lane.b32.xlu0 %v465_v19, %s998_s12  ;;  %s713_s12 = sshll.u32 %s1192_s20, 4  ;;  %s1298_s12 = int_to_ptr.vmem [resolvable:$true] %s713_s12 }
 0x128   : > { %407 = vperm.xlu1 %881, %v1168_v7  }
 0x129   : > { %683 = vperm.xlu0 %882, %v680_v32  }
 0x186   : > { %v392_v43 = vpop.permute.xlu1 %391 }
 0x187   : > { %v1220_v44 = vsel %vm395_vm2, 0.0, %v392_v43  ;;  %v394_v45 = vpop.permute.xlu0 %393 }
 0x188   : > { %v533_v46 = vmul.f32 %v531_v35, %v1220_v44  ;;  %v431_v47 = vmul.f32 %v429_v38, %v1220_v44  ;;  %v1224_v48 = vsel %vm395_vm2, %v394_v45, 0.0  ;;  %v1227_v50 = vsel %vm395_vm2, %v392_v43, %v394_v45 }
 0x189   : > { %v433_v49 = vmul.f32 %v429_v38, %v1224_v48  ;;  %v534_v51 = vmul.f32 %v531_v35, %v1227_v50  ;;  %v498_v56 = vmul.f32 %v1208_v34, %v1220_v44  ;;  %v432_v58 = vmul.f32 %v429_v38, %v1227_v50 }
 0x18a   : > { %539 = vrot.lane.b32.xlu1 %v533_v46, %s999_s19  ;;  %437 = vrot.lane.b32.xlu0 %v431_v47, %s1000_s21  ;;  %v556_v60 = vmul.f32 %v1214_v40, %v1220_v44  ;;  %v535_v62 = vmul.f32 %v531_v35, %v1224_v48  ;;  %v455_v63 = vmul.f32 %v1206_v33, %v1227_v50 }
 0x18b   : > { %v510_v57 = vmul.f32 %v1212_v39, %v498_v56  ;;  %v454_v4 = vmul.f32 %v1206_v33, %v1220_v44  ;;  %v500_v5 = vmul.f32 %v1208_v34, %v1224_v48  ;;  %v558_v10 = vmul.f32 %v1214_v40, %v1224_v48 }
 0x18c   : > { %v476_v3 = vmul.f32 %v471_v1, %v455_v63  ;;  %v591_v11 = vmul.f32 %v1218_v42, %v1220_v44  ;;  %v592_v17 = vmul.f32 %v1218_v42, %v1227_v50  ;;  %v456_v23 = vmul.f32 %v1206_v33, %v1224_v48 }
 0x18d   : > { %v475_v8 = vmul.f32 %v467_v36, %v454_v4  ;;  %v512_v9 = vmul.f32 %v1216_v41, %v500_v5  ;;  %v499_v28 = vmul.f32 %v1208_v34, %v1227_v50  ;;  %v557_v32 = vmul.f32 %v1214_v40, %v1227_v50 }
 0x18e   : > { %441 = vrot.lane.b32.xlu0 %v433_v49, %s1000_s21  ;;  %v477_v27 = vmul.f32 %v1210_v37, %v456_v23  ;;  %v593_v35 = vmul.f32 %v1218_v42, %v1224_v48 }
 0x18f   : > { %v511_v30 = vmul.f32 %v506_v29, %v499_v28 }
 0x192   : > { %541 = vrot.lane.b32.xlu0 %v534_v51, %s999_s19 }
 0x197   : > { %v1230_v52 = vpop.permute.xlu1 %646 }
 0x198   : > { %v624_v53 = vpop.permute.xlu0 %623  ;;  %v649_v16 = vmul.f32 %v1230_v52, %v1220_v44  ;;  %v650_v25 = vmul.f32 %v1230_v52, %v1227_v50  ;;  %v651_v36 = vmul.f32 %v1230_v52, %v1224_v48 }
 0x199   : > { %v626_v54 = vmul.f32 %v624_v53, %v1220_v44  ;;  %v628_v55 = vmul.f32 %v624_v53, %v1224_v48  ;;  %v627_v2 = vmul.f32 %v624_v53, %v1227_v50 }
 0x19b   : > { %632 = vrot.lane.b32.xlu1 %v626_v54, %s1001_s9  ;;  %636 = vrot.lane.b32.xlu0 %v628_v55, %s1001_s9  ;;  %v560_v59 = vpop.permute.xlu1 %559 }
 0x19c   : > { %v568_v61 = vmul.f32 %v560_v59, %v556_v60  ;;  %v562_v0 = vpop.permute.xlu0 %561 }
 0x19d   : > { %v570_v12 = vmul.f32 %v562_v0, %v558_v10  ;;  %v564_v31 = vsel %vm563_vm7, %v560_v59, %v562_v0 }
 0x19e   : > { %v569_v33 = vmul.f32 %v564_v31, %v557_v32 }
 0x19f   : > { %516 = vrot.lane.b32.xlu0 %v510_v57, %s1002_s11  ;;  %439 = vrot.lane.b32.xlu1 %v432_v58, %s1000_s21  ;;  %v595_v6 = vpop.permute.xlu1 %594  ;;  %s699_s21 = scalar_lea.sflag [#allocation4], %s1153_s8 }
 0x1a0   : > { %v597_v7 = vpop.permute.xlu0 %596  ;;  %v603_v13 = vmul.f32 %v595_v6, %v591_v11 }
 0x1a1   : > { %v599_v14 = vsel %vm598_vm4, %v595_v6, %v597_v7  ;;  %v605_v34 = vmul.f32 %v597_v7, %v593_v35 }
 0x1a2   : > { %v604_v19 = vmul.f32 %v599_v14, %v592_v17 }
 0x1a3   : > { %543 = vrot.lane.b32.xlu1 %v535_v62, %s999_s19  ;;  %574 = vrot.lane.b32.xlu0 %v568_v61, %s1003_s16  ;;  %v653_v15 = vpop.permute.xlu1 %652  ;;  %s1296_s19 = scalar_lea.hbm %s1348_s7, %s801_s29 }
 0x1a4   : > { %v655_v18 = vpop.permute.xlu0 %654  ;;  %v661_v20 = vmul.f32 %v653_v15, %v649_v16 }
 0x1a5   : > { %v657_v24 = vsel %vm656_vm5, %v653_v15, %v655_v18  ;;  %v663_v37 = vmul.f32 %v655_v18, %v651_v36 }
 0x1a6   : > { %v662_v26 = vmul.f32 %v657_v24, %v650_v25 }
 0x1a7   : > { %634 = vrot.lane.b32.xlu1 %v627_v2, %s1001_s9  ;;  %483 = vrot.lane.b32.xlu0 %v476_v3, %s1004_s17  ;;  %v408_v40 = vpop.permute.xlu1 %407  ;;  %s914_s9 = scalar_lea.vmem %s1298_s12, 256 }
 0x1a8   : > { %v1282_v38 = vpop.permute.xlu0 %683  ;;  %v410_v57 = vmul.f32 %v408_v40, %v1220_v44  ;;  %v411_v58 = vmul.f32 %v408_v40, %v1227_v50  ;;  %p915_p6 = scmp.ne.s32.totalorder %s1298_s12, %s914_s9 }
 0x1aa   : > { %v423_v62 = vmul.f32 %v1185_v21, %v410_v57  ;;  %v424_v63 = vmul.f32 %v1188_v22, %v411_v58  ;;  %p916_p12 = pnand %p915_p6, %p1357_p11 }
 0x1ab   : > { %481 = vrot.lane.b32.xlu1 %v475_v8, %s1004_s17  ;;  %520 = vrot.lane.b32.xlu0 %v512_v9, %s1002_s11 }
 0x1ac   : > { %p917_p13 = pneg %p916_p12 }
 0x1af   : > { %578 = vrot.lane.b32.xlu0 %v570_v12, %s1003_s16  ;;  %609 = vrot.lane.b32.xlu1 %v603_v13, %s1005_s22 }
 0x1b3   : > { %611 = vrot.lane.b32.xlu0 %v604_v19, %s1005_s22  ;;  %667 = vrot.lane.b32.xlu1 %v661_v20, %s1006_s23 }
 0x1b7   : > { %485 = vrot.lane.b32.xlu1 %v477_v27, %s1004_s17  ;;  %669 = vrot.lane.b32.xlu0 %v662_v26, %s1006_s23 }
 0x1bb   : > { %518 = vrot.lane.b32.xlu1 %v511_v30, %s1002_s11  ;;  %s918_s11 = sshll.u32 %s1007_s28, 4  ;;  %s919_s11 = int_to_ptr.vmem [resolvable:$false] %s918_s11 }
 0x1bc   : > { %p921_p7 = scmp.lt.s32.totalorder %s1298_s12, %s919_s11 }
 0x1bf   : > { %576 = vrot.lane.b32.xlu1 %v569_v33, %s1003_s16  ;;  %s920_s16 = scalar_lea.vmem %s919_s11, 512 }
 0x1c0   : > { %p922_p10 = scmp.lt.s32.totalorder %s920_s16, %s914_s9 }
 0x1c2   : > { %p923_p2 = por %p922_p10, %p921_p7 }
 0x1c3   : > { %613 = vrot.lane.b32.xlu1 %v605_v34, %s1005_s22 }
 0x1c4   : > { %p924_p4 = pnand %p923_p2, %p917_p13 }
 0x1c7   : > { %671 = vrot.lane.b32.xlu1 %v663_v37, %s1006_s23 }
 0x1fc   : > { %v438_v39 = vpop.permute.xlu0 %437  ;;  %v540_v43 = vpop.permute.xlu1 %539 }
 0x200   : > { %v442_v41 = vpop.permute.xlu0 %441 }
 0x204   : > { %v542_v45 = vpop.permute.xlu0 %541 }
 0x205   : > { %v546_v21 = vsel %vm545_vm11, %v540_v43, %v542_v45 }
 0x20d   : > { %v637_v46 = vpop.permute.xlu0 %636  ;;  %v633_v47 = vpop.permute.xlu1 %632 }
 0x211   : > { %v517_v49 = vpop.permute.xlu0 %516  ;;  %v440_v42 = vpop.permute.xlu1 %439 }
 0x212   : > { %v444_v60 = vsel %vm443_vm8, %v438_v39, %v440_v42  ;;  %v445_v61 = vsel %vm443_vm8, %v440_v42, %v442_v41 }
 0x213   : > { %v448_v4 = vadd.f32 %v444_v60, %v423_v62  ;;  %v449_v5 = vadd.f32 %v445_v61, %v424_v63 }
 0x215   : > { %v544_v51 = vpop.permute.xlu1 %543  ;;  %v575_v53 = vpop.permute.xlu0 %574 }
 0x216   : > { %v547_v12 = vsel %vm545_vm11, %v542_v45, %v544_v51 }
 0x219   : > { %v635_v54 = vpop.permute.xlu1 %634  ;;  %v484_v55 = vpop.permute.xlu0 %483 }
 0x21a   : > { %v639_v25 = vsel %vm638_vm14, %v633_v47, %v635_v54  ;;  %v640_v29 = vsel %vm638_vm14, %v635_v54, %v637_v46 }
 0x21d   : > { %v482_v56 = vpop.permute.xlu1 %481  ;;  %v521_v52 = vpop.permute.xlu0 %520 }
 0x21e   : > { %v488_v2 = vsel %vm487_vm9, %v482_v56, %v484_v55 }
 0x21f   : > { %v492_v44 = vadd.f32 %v488_v2, %v448_v4 }
 0x221   : > { %v610_v48 = vpop.permute.xlu1 %609  ;;  %v579_v0 = vpop.permute.xlu0 %578 }
 0x225   : > { %v668_v59 = vpop.permute.xlu1 %667  ;;  %v612_v9 = vpop.permute.xlu0 %611 }
 0x226   : > { %v616_v18 = vsel %vm615_vm13, %v610_v48, %v612_v9 }
 0x229   : > { %v486_v1 = vpop.permute.xlu1 %485  ;;  %v670_v19 = vpop.permute.xlu0 %669 }
 0x22a   : > { %v489_v3 = vsel %vm487_vm9, %v484_v55, %v486_v1  ;;  %v674_v30 = vsel %vm673_vm15, %v668_v59, %v670_v19 }
 0x22b   : > { %v493_v6 = vadd.f32 %v489_v3, %v449_v5 }
 0x22d   : > { %v519_v50 = vpop.permute.xlu1 %518 }
 0x22e   : > { %v523_v7 = vsel %vm522_vm10, %v517_v49, %v519_v50  ;;  %v524_v8 = vsel %vm522_vm10, %v519_v50, %v521_v52 }
 0x22f   : > { %v527_v10 = vadd.f32 %v523_v7, %v492_v44  ;;  %v528_v11 = vadd.f32 %v524_v8, %v493_v6 }
 0x231   : > { %v550_v22 = vadd.f32 %v546_v21, %v527_v10  ;;  %v551_v13 = vadd.f32 %v547_v12, %v528_v11  ;;  %v577_v14 = vpop.permute.xlu1 %576 }
 0x232   : > { %v581_v15 = vsel %vm580_vm12, %v575_v53, %v577_v14  ;;  %v582_v16 = vsel %vm580_vm12, %v577_v14, %v579_v0 }
 0x233   : > { %v585_v17 = vadd.f32 %v581_v15, %v550_v22  ;;  %v586_v20 = vadd.f32 %v582_v16, %v551_v13 }
 0x235   : > { %v620_v23 = vadd.f32 %v616_v18, %v585_v17  ;;  %v614_v24 = vpop.permute.xlu1 %613 }
 0x236   : > { %v617_v26 = vsel %vm615_vm13, %v612_v9, %v614_v24 }
 0x237   : > { %v643_v27 = vadd.f32 %v639_v25, %v620_v23  ;;  %v621_v28 = vadd.f32 %v617_v26, %v586_v20 }
 0x239   : > { %v678_v31 = vadd.f32 %v674_v30, %v643_v27  ;;  %v644_v32 = vadd.f32 %v640_v29, %v621_v28  ;;  %v672_v33 = vpop.permute.xlu1 %671 }
 0x23a   : > { %v675_v35 = vsel %vm673_vm15, %v670_v19, %v672_v33 }
 0x23b   : > { %v686_v34 = vadd.f32 %v1282_v38, %v678_v31  ;;  %v679_v36 = vadd.f32 %v675_v35, %v644_v32 }
 0x23d   : > { %v688_v37 = vmax.f32 %v686_v34, 0.0  ;;  %v687_v39 = vadd.f32 %v1282_v38, %v679_v36 }
 0x23f   : > { %v692_v41 = vrot.slane %v688_v37, 4  ;;  %v689_v40 = vmax.f32 %v687_v39, 0.0 }
 0x241   : > { %696 = vst [vmem:[%s1192_s20] sm:$0xf0] %v692_v41  ;;  %v693_v43 = vrot.slane %v689_v40, 4 }
 0x243   : > { %697 = vst [vmem:[%s1192_s20 + $0x8] sm:$0xf0] %v693_v43 }
 0x244   : > { %927 = shalt.err (!%p924_p4)
}
 0x245   : > { %s928_s8 = scalar_lea.hbm %s1296_s19, 256  ;;  %s932_s22 = scalar_lea.hbm %s1348_s7, 512 }
 0x246   : > { %p929_p5 = scmp.ne.s32.totalorder %s1296_s19, %s928_s8  ;;  %p933_p0 = scmp.lt.u32.totalorder %s1296_s19, %s1348_s7 }
 0x247   : > { %p934_p1 = scmp.lt.u32.totalorder %s932_s22, %s928_s8  ;;  %p936_p6 = scmp.lt.u32.totalorder %s928_s8, %s1296_s19 }
 0x248   : > { %p930_p8 = pnand %p929_p5, %p1357_p11 }
 0x249   : > { %p935_p3 = por %p934_p1, %p933_p0 }
 0x24a   : > { %p931_p9 = pneg %p930_p8 }
 0x24b   : > { %p937_p12 = por %p936_p6, %p935_p3 }
 0x24d   : > { %p938_p13 = pnand %p937_p12, %p931_p9 }
 0x24f   : > { %941 = shalt.err (!%p938_p13)
}
 0x250   : > { %804 = dma.vmem_to_hbm [thread:$0]  (%p1357_p11), %s1298_s12, 256, %s1296_s19, %s699_s21  }
 0x251 PF: > { %s725_s18 = sand.u32 1, %s968_s24   ;;  %p1358_p7 = scmp.ne.s32.totalorder %s1353_s14, 0 }
 0x252   : > { %p1359_p10 = scmp.ge.s32.totalorder %s980_s27, 2  ;;  %s726_s15 = scalar_lea.sflag [#allocation4], %s725_s18 }
 0x254   : > { %p811_p2 = pnand %p1359_p10, %p1358_p7 }
 0x256   : > { %963 = dma.done.wait (!%p811_p2), %s726_s15, 256  }
 0x257   : > { %965 = vsyncadd (!%p811_p2), %s726_s15, 4294967040  ;;  %p20_p4 = scmp.ge.s32.totalorder %s1073_s30, 4   ;;  %s1360_s24 = smov %s972_s25 }
 0x258   : > { %s1361_s25 = smov %s976_s26  ;;  %s1362_s26 = smov %s1085_s10 }
 0x259   : > { %s1363_s27 = smov %s1073_s30  ;;  %22 = sbr.rel (!%p20_p4) target bundleno = 5 (0x5), region = 93 }
 0x260   :  { %731 = vsyncpa [#allocation3], 1 }
 0x261   :  { %733 = vsyncpa [#allocation3 + $0x1], 1 }
 0x262   :  { %734 = vsyncpa [#allocation4], 1 }
 0x263   :  { %736 = vsyncpa [#allocation4 + $0x1], 1 }

</bundles_post_ra>
